<compile_context>
chip_gen: v5e
topology: v5e:2x2
jax: 0.10.0
libtpu: 0.0.40
codegen_flags: <defaults>
</compile_context>

<pallas_src>
import math

import jax
import jax.numpy as jnp
from jax.experimental import pallas as pl
from jax.experimental.pallas import tpu as pltpu


def _add_pe_kernel(x_ref, pe_ref, o_ref):
    # Compute in f32 (matches PyTorch promotion for low-precision x), cast on store.
    o_ref[...] = (
        x_ref[...].astype(jnp.float32) + pe_ref[...].astype(jnp.float32)
    ).astype(o_ref.dtype)


def make_positional_encoding(d_model: int, max_len: int = 6) -> jnp.ndarray:
    """Build the pe buffer exactly like the PyTorch __init__ (f32, shape (1, max_len, d))."""
    position = jnp.arange(max_len, dtype=jnp.float32)[:, None]              # (max_len, 1)
    div_term = jnp.exp(
        jnp.arange(0, d_model, 2, dtype=jnp.float32) * (-math.log(10000.0) / d_model)
    )                                                                        # (ceil(d/2),)
    pe = jnp.zeros((1, max_len, d_model), dtype=jnp.float32)
    pe = pe.at[0, :, 0::2].set(jnp.sin(position * div_term))
    pe = pe.at[0, :, 1::2].set(jnp.cos(position * div_term[: d_model // 2]))
    return pe


def _sublane_align(dtype) -> int:
    # Sub-32-bit dtypes pack along sublanes: f32 -> 8, bf16 -> 16, int8/fp8 -> 32.
    return max(8, 32 // jnp.dtype(dtype).itemsize)


def _pick_block(dim: int, align: int, target: int) -> int:
    """Largest multiple of `align` <= min(target, dim); full dim when dim <= align.

    Combined with a cdiv grid (ragged last block masked), the returned block always
    satisfies the TPU (8, 128) rule: multiple of `align`, or equal to the full dim.
    """
    if dim <= align:
        return dim
    t = min(target, dim)
    return max(align, (t // align) * align)


def positional_encoding_forward(x: jnp.ndarray, pe: jnp.ndarray) -> jnp.ndarray:
    """x: [B, S, D]; pe: [1, max_len, D] (f32).  Returns x + pe[:, :S, :]."""
    B, S, D = x.shape
    max_len = pe.shape[1]
    if S > max_len:
        raise ValueError(f"sequence length {S} exceeds positional-encoding max_len {max_len}")
    if pe.shape[2] != D:
        raise ValueError(f"d_model mismatch: x has {D}, pe has {pe.shape[2]}")

    # PyTorch-style dtype promotion (bf16 x + f32 pe -> f32 output).
    out_dtype = jnp.promote_types(x.dtype, pe.dtype)
    pe_s = pe[:, :S, :]  # tiny slice; pe itself is a persistent buffer

    s_align = _sublane_align(x.dtype)
    lane_align = 128

    # Lane (last-dim) block: multiples of 128 up to 4096 lanes, or the full D when D
    # is not 128-aligned (allowed by the block rule; demo D=32 takes this path).
    tD = D if (D < lane_align or D % lane_align != 0) else _pick_block(D, lane_align, 4096)

    # Sublane block: ~4 MiB blocks in f32 terms (pe/accumulation dtype), amortizing
    # per-grid-step overhead while 3 refs x 2 buffers stays ~24 MiB.
    target_rows = max(s_align, (4 * 1024 * 1024) // max(1, tD * 4))
    tS = _pick_block(S, s_align, target_rows)

    grid_b = B
    grid_s = pl.cdiv(S, tS)
    grid_d = pl.cdiv(D, tD)

    # v7x has 2 TensorCores; make sure a non-trivial input yields >= 2 parallel steps.
    if grid_b * grid_s * grid_d == 1 and S >= 2 * s_align:
        tS = _pick_block(S, s_align, max(s_align, tS // 2))
        grid_s = pl.cdiv(S, tS)

    out = pl.pallas_call(
        _add_pe_kernel,
        out_shape=jax.ShapeDtypeStruct((B, S, D), out_dtype),
        grid_spec=pltpu.PrefetchScalarGridSpec(
            num_scalar_prefetch=0,
            grid=(grid_b, grid_s, grid_d),
            in_specs=[
                pl.BlockSpec((1, tS, tD), lambda b, j, k: (b, j, k)),  # x tile
                pl.BlockSpec((1, tS, tD), lambda b, j, k: (0, j, k)),  # pe tile (batch-broadcast)
            ],
            out_specs=pl.BlockSpec((1, tS, tD), lambda b, j, k: (b, j, k)),
        ),
        compiler_params=pltpu.CompilerParams(
            # Pure elementwise add: every grid axis is independent -> shard freely.
            dimension_semantics=("parallel", "parallel", "parallel"),
            # 3 refs x 2 pipeline buffers x <=4 MiB ~= 24 MiB; 48 MiB leaves headroom
            # under v7x's 64 MiB physical VMEM and overrides v5e's 16 MiB scoped default.
            vmem_limit_bytes=48 * 1024 * 1024,
        ),
    )(x, pe_s)

    return out


if __name__ == "__main__":
    d_model = 32
    max_len = 6
    batch = 2
    seq = 4  # <= max_len, matching the PyTorch pe[:, :x.size(1), :] contract

    key = jax.random.PRNGKey(0)
    x = jax.random.normal(key, (batch, seq, d_model), dtype=jnp.float32)

    pe = make_positional_encoding(d_model, max_len)

    out = positional_encoding_forward(x, pe)
    out = jax.block_until_ready(out)

    # Reference check in plain JAX.
    ref = x + pe[:, :seq, :]
    assert out.shape == (batch, seq, d_model)
    assert out.dtype == ref.dtype
    assert jnp.allclose(out, ref, atol=1e-6), "mismatch vs reference"

    print("KERNEL_OK")
</pallas_src>

<mosaic_0001>
module attributes {stable_mosaic.version = 11 : i64} {
  func.func @_add_pe_kernel(%arg0: i32, %arg1: i32, %arg2: i32, %arg3: memref<1x4x32xf32, #tpu.memory_space<vmem>>, %arg4: memref<1x4x32xf32, #tpu.memory_space<vmem>>, %arg5: memref<1x4x32xf32, #tpu.memory_space<vmem>>) attributes {dimension_semantics = [#tpu.dimension_semantics<parallel>, #tpu.dimension_semantics<parallel>, #tpu.dimension_semantics<parallel>], iteration_bounds = array<i64: 2, 1, 1>, scalar_prefetch = 0 : i64, scratch_operands = 0 : i64, tpu.core_type = #tpu.core_type<tc>, window_params = [{transform_indices = @transform_0, window_bounds = array<i64: 1, 4, 32>}, {transform_indices = @transform_1, window_bounds = array<i64: 1, 4, 32>}, {transform_indices = @transform_2, window_bounds = array<i64: 1, 4, 32>}]} {
    %c0 = arith.constant 0 : index
    %c0_0 = arith.constant 0 : index
    %c0_1 = arith.constant 0 : index
    %0 = vector.load %arg3[%c0, %c0_0, %c0_1] : memref<1x4x32xf32, #tpu.memory_space<vmem>>, vector<1x4x32xf32>
    %c0_2 = arith.constant 0 : index
    %c0_3 = arith.constant 0 : index
    %c0_4 = arith.constant 0 : index
    %1 = vector.load %arg4[%c0_2, %c0_3, %c0_4] : memref<1x4x32xf32, #tpu.memory_space<vmem>>, vector<1x4x32xf32>
    %2 = arith.addf %0, %1 : vector<1x4x32xf32>
    %c0_5 = arith.constant 0 : index
    %c0_6 = arith.constant 0 : index
    %c0_7 = arith.constant 0 : index
    %3 = vector.load %arg5[%c0_5, %c0_6, %c0_7] : memref<1x4x32xf32, #tpu.memory_space<vmem>>, vector<1x4x32xf32>
    tpu.vector_store %arg5[%c0_5, %c0_6, %c0_7], %2 {strides = array<i32>} : memref<1x4x32xf32, #tpu.memory_space<vmem>>, vector<1x4x32xf32>,
    return
  }
  func.func @transform_0(%arg0: i32, %arg1: i32, %arg2: i32) -> (i32, i32, i32) {
    %c0_i32 = arith.constant 0 : i32
    return %arg0, %arg1, %arg2 : i32, i32, i32
  }
  func.func @transform_1(%arg0: i32, %arg1: i32, %arg2: i32) -> (i32, i32, i32) {
    %c0_i32 = arith.constant 0 : i32
    %c0_i32_0 = arith.constant 0 : i32
    return %c0_i32, %arg1, %arg2 : i32, i32, i32
  }
  func.func @transform_2(%arg0: i32, %arg1: i32, %arg2: i32) -> (i32, i32, i32) {
    %c0_i32 = arith.constant 0 : i32
    return %arg0, %arg1, %arg2 : i32, i32, i32
  }
}

</mosaic_0001>

<bundles_post_ra>
// kernel: tpu_custom_call.1
= control target key start
LH: loop header
LB: loop body
LE: loop exit
PB: predicated region body
PF: predicated region fallthrough
CT: control target
= control target key end

     0   :  { %7 = vsyncpa [#allocation3], 0  ;;  %s737_s0 = inlined_call_operand.hbm [shape: f32[2,4,32], index: 0, kind: input, shape index: {}]   ;;  %s738_s1 = inlined_call_operand.hbm [shape: f32[1,4,32], index: 1, kind: input, shape index: {}]   ;;  %s739_s2 = inlined_call_operand.hbm [shape: f32[2,4,32], index: 2, kind: output, shape index: {}]  }
   0x1   :  { %9 = vsyncpa [#allocation3 + $0x1], 0 }
   0x2   :  { %10 = vsyncpa [#allocation6], 0 }
   0x3   :  { %11 = vsyncpa [#allocation4], 0 }
   0x4   :  { %13 = vsyncpa [#allocation4 + $0x1], 0  ;;  %s588_s9 = smov 0   ;;  %s590_s10 = smov 0  }
   0x5   :  { %s592_s11 = smov 0   ;;  %s594_s12 = smov 0  }
   0x6   :  { %s596_s13 = smov 0   ;;  %s598_s14 = smov 0  }
   0x7 LB: > { %s336_s15 = sadd.s32 4294967295, %s570_s14   ;;  %s337_s16 = sadd.s32 4294967294, %s570_s14   ;;  %s570_s14 = sphi %s598_s14, %s19_s14   ;;  %s566_s13 = sphi %s596_s13, %s751_s13   ;;  %s562_s12 = sphi %s594_s12, %s750_s12   ;;  %s558_s11 = sphi %s592_s11, %s749_s11   ;;  %s554_s10 = sphi %s590_s10, %s748_s10   ;;  %s550_s9 = sphi %s588_s9, %s747_s9  }
   0x8   : > { %p62_p0 = scmp.ne.s32.totalorder %s554_s10, %s550_s9  ;;  %p622_p1 = scmp.eq.s32.totalorder %s336_s15, 0 }
   0x9   : > { %p626_p2 = scmp.eq.s32.totalorder %s336_s15, 1  ;;  %p124_p3 = scmp.eq.s32.totalorder %s337_s16, 1 }
   0xa   : > { %p632_p4 = por %p622_p1, %p62_p0  ;;  %p338_p5 = scmp.ge.s32.totalorder %s570_s14, 1 }
   0xb   : > { %p637_p6 = por %p124_p3, %p62_p0  ;;  %p131_p7 = scmp.lt.s32.totalorder %s570_s14, 3 }
   0xc   : > { %s146_s23 = sshll.u32 %s738_s1, 4  ;;  %p340_p9 = scmp.ge.s32.totalorder %s570_s14, 2  ;;  %s147_s23 = int_to_ptr.hbm [resolvable:$true] %s146_s23 }
   0xd   : > { %p645_p8 = pnand %p338_p5, %p131_p7  ;;  %s572_s25 = smov [#allocation5]  }
   0xe   : > { %s148_s26 = sshll.u32 %s572_s25, 4  ;;  %s38_s27 = sadd.s32 1, %s566_s13  ;;  %s149_s26 = int_to_ptr.vmem [resolvable:$true] %s148_s26 }
   0xf   : > { %p359_p10 = pneg %p645_p8  ;;  %p40_p12 = scmp.ge.s32.totalorder %s38_s27, 2 }
  0x10   : > { %s49_s28 = sadd.s32 1, %s558_s11  ;;  %p56_p13 = scmp.ne.s32.totalorder %s558_s11, %s554_s10 }
  0x11   : > { %p360_p11 = pnand %p359_p10, %p622_p1  ;;  %p57_p0 = scmp.eq.s32.totalorder %s570_s14, 0 }
  0x12   : > { %s753_s27 = smov (%p40_p12, %s38_s27), 0  ;;  %p667_p5 = por %p626_p2, %p56_p13 }
  0x13   : > { %362 = dma.hbm_to_vmem [thread:$0]  (!%p360_p11), %s147_s23, 64, %s149_s26, [#allocation6]  }
  0x14   : > { %p661_p3 = por %p57_p0, %p56_p13  ;;  %s42_s3 = ssub.s32 %s566_s13, %s753_s27 }
  0x15   : > { %p372_p7 = scmp.lt.s32.totalorder %s570_s14, 2  ;;  %p47_p10 = scmp.eq.s32.totalorder %s42_s3, 0 }
  0x16   : > { %s159_s4 = sand.u32 1, %s558_s11   ;;  %s342_s7 = sshll.u32 %s566_s13, 2 }
  0x17   : > { %s341_s5 = sshll.u32 %s159_s4, 2  ;;  %s169_s16 = scalar_lea.hbm %s737_s0, %s342_s7 }
  0x18   : > { %s676_s6 = scalar_select %p47_p10, %s558_s11, %s49_s28  }
  0x19   : > { %s163_s21 = scalar_lea.vmem [#allocation2], %s341_s5  ;;  %s171_s18 = sshll.u32 %s169_s16, 4  ;;  %s172_s18 = int_to_ptr.hbm [resolvable:$true] %s171_s18 }
  0x1a   : > { %s173_s22 = sshll.u32 %s163_s21, 4  ;;  %p364_p2 = pnand %p372_p7, %p661_p3  ;;  %s174_s22 = int_to_ptr.vmem [resolvable:$true] %s173_s22 }
  0x1b   : > { %s160_s23 = scalar_lea.sflag [#allocation3], %s159_s4  ;;  %182 = sbr.rel (%p645_p8) target bundleno = 50 (0x32), region = 28 }
  0x1c   : > { %366 = dma.hbm_to_vmem [thread:$0]  (!%p364_p2), %s172_s18, 64, %s174_s22, %s160_s23  }
  0x1d   : > { %s687_s25 = sand.u32 (!%p645_p8), 1, %s554_s10  }
  0x1e   : > { %s344_s26 = sshll.u32 (!%p645_p8), %s687_s25, 2  ;;  %s185_s28 = scalar_lea.sflag (!%p645_p8), [#allocation3], %s687_s25 }
  0x1f   : > { %s188_s3 = scalar_lea.vmem (!%p645_p8), [#allocation2], %s344_s26 }
  0x20   : > { %537 = dma.done.wait (%p632_p4), %s185_s28, 64  }
  0x21   : > { %539 = vsyncadd (%p632_p4), %s185_s28, 4294967232 }
  0x22   : > { %541 = dma.done.wait (%p622_p1), [#allocation6], 64  }
  0x23   : > { %543 = vsyncadd (%p622_p1), [#allocation6], 4294967232  ;;  %s348_s24 = sshll.u32 %s562_s12, 2  ;;  %s214_s7 = scalar_lea.vmem [#allocation7], %s344_s26  ;;  %v215_v0 = vld [vmem:[%s188_s3] sm:$0xf] }
  0x24   : > { %s233_s5 = scalar_lea.hbm %s739_s2, %s348_s24  ;;  %s235_s8 = sshll.u32 %s214_s7, 4  ;;  %v216_v1 = vld [vmem:[#allocation5] sm:$0xf]  ;;  %vm218_vm0 = vcmask 257024   ;;  %s236_s8 = int_to_ptr.vmem [resolvable:$true] %s235_s8 }
  0x25   : > { %s237_s15 = sshll.u32 %s233_s5, 4  ;;  %v217_v2 = vadd.f32 %v216_v1, %v215_v0  ;;  %s221_s17 = scalar_lea.sflag [#allocation4], %s687_s25  ;;  %s238_s15 = int_to_ptr.hbm [resolvable:$true] %s237_s15 }
  0x26   : > { %s498_s19 = sshra.s32 %s238_s15, 4  ;;  %s504_s22 = scalar_lea.hbm %s739_s2, 8  ;;  %s499_s19 = int_to_ptr.hbm [resolvable:$true] %s498_s19 }
  0x27   : > { %219 = vst.msk [vmem:[%s214_s7] sm:$0xf] %vm218_vm0, %v217_v2  ;;  %s500_s16 = scalar_lea.hbm %s499_s19, 4  ;;  %p505_p11 = scmp.lt.s32.totalorder %s499_s19, %s739_s2 }
  0x28   : > { %p501_p1 = scmp.ne.s32.totalorder %s499_s19, %s500_s16  ;;  %p506_p12 = scmp.lt.s32.totalorder %s504_s22, %s500_s16 }
  0x2a   : > { %p502_p4 = pnand %p501_p1, %p667_p5  ;;  %p507_p13 = por %p506_p12, %p505_p11 }
  0x2c   : > { %p503_p8 = pneg %p502_p4 }
  0x2e   : > { %p508_p0 = pnand %p507_p13, %p503_p8 }
  0x30   : > { %511 = shalt.err (!%p508_p0)
}
  0x31   : > { %357 = dma.vmem_to_hbm [thread:$0]  (%p667_p5), %s236_s8, 64, %s238_s15, %s221_s17  }
  0x32 PF: > { %s249_s25 = sand.u32 1, %s550_s9   ;;  %p368_p3 = pnand %p340_p9, %p637_p6 }
  0x33   : > { %s250_s26 = scalar_lea.sflag [#allocation4], %s249_s25 }
  0x34   : > { %p369_p7 = pneg %p368_p3 }
  0x36   : > { %545 = dma.done.wait (%p369_p7), %s250_s26, 64  }
  0x37   : > { %547 = vsyncadd (%p369_p7), %s250_s26, 4294967232  ;;  %s19_s14 = sadd.s32 1, %s570_s14   ;;  %s747_s9 = smov %s554_s10 }
  0x38   : > { %p16_p10 = scmp.ge.s32.totalorder %s19_s14, 4   ;;  %s748_s10 = smov %s558_s11 }
  0x39   : > { %s749_s11 = smov %s676_s6  ;;  %s750_s12 = smov %s566_s13 }
  0x3a   : > { %s751_s13 = smov %s753_s27  ;;  %18 = sbr.rel (!%p16_p10) target bundleno = 7 (0x7), region = 78 }
  0x3f   :  { %256 = vsyncpa [#allocation3], 1 }
  0x40   :  { %258 = vsyncpa [#allocation3 + $0x1], 1 }
  0x41   :  { %259 = vsyncpa [#allocation6], 1 }
  0x42   :  { %260 = vsyncpa [#allocation4], 1 }
  0x43   :  { %262 = vsyncpa [#allocation4 + $0x1], 1 }

</bundles_post_ra>
